<compile_context>
chip_gen: v7x
topology: tpu7x:2x2x1
jax: 0.10.0
libtpu: 0.0.40
codegen_flags: <defaults>
</compile_context>

<pallas_src>
import jax
import jax.numpy as jnp
from jax.experimental import pallas as pl
from jax.experimental.pallas import tpu as pltpu

N_STATES = 5
N_HIDDEN = 15
N_ACTIONS = 3

_DEFAULT_BLOCK_B = 4096  # sweep 2048 / 4096 / 8192


def _round_up(n, m):
    return ((n + m - 1) // m) * m


def _choose_block(batch, block_b):
    """Pick a lane-aligned batch block.

    - Large enough to amortize the ~600-cycle per-grid-step overhead.
    - cdiv-balanced so the tail block is not mostly padding.
    - >= 2 grid steps whenever batch >= 256 so the "parallel" axis can shard
      across v7x's two TensorCores (no-op cost on v5e/v6e).
    """
    block_b = max(128, _round_up(block_b, 128))
    n_blocks = pl.cdiv(batch, block_b)
    if batch >= 256:
        n_blocks = max(n_blocks, 2)
    return _round_up(pl.cdiv(batch, n_blocks), 128)


def _mlp_kernel(x_ref, w1_ref, b1_ref, w2_ref, b2_ref, w3_ref, b3_ref, o_ref):
    # x_ref: (N_STATES, bb) f32 -- batch on the lane axis.
    # w1_ref/w2_ref: bf16; biases and w3/b3: f32.

    # fc1: (15, 5) @ (5, bb) -> (15, bb); bf16 MXU, f32 accumulate,
    # bias + ReLU in f32.
    x = x_ref[...].astype(jnp.bfloat16)
    h1 = jnp.dot(w1_ref[...], x, preferred_element_type=jnp.float32)
    h1 = jnp.maximum(h1 + b1_ref[...], 0.0)

    # fc2: (15, 15) @ (15, bb) -> (15, bb); streamed operand cast to bf16
    # (1 sublane tile per lane column instead of 2 in f32).
    h1b = h1.astype(jnp.bfloat16)
    h2 = jnp.dot(w2_ref[...], h1b, preferred_element_type=jnp.float32)
    h2 = jnp.maximum(h2 + b2_ref[...], 0.0)

    # out: 15 -> 3 as an unrolled VPU FMA chain (outer-product accumulate).
    # Kept off the MXU (a 3-wide MXU result wastes >98% of the tile and adds
    # pushes to the binding MXU path).  Split into 3 partial accumulators to
    # break the serial dependence chain.
    w3 = w3_ref[...]                                    # (3, 15) f32
    acc0 = b3_ref[...] + w3[:, 0:1] * h2[0:1, :]        # (3, bb)
    acc1 = w3[:, 1:2] * h2[1:2, :]
    acc2 = w3[:, 2:3] * h2[2:3, :]
    for k in range(3, N_HIDDEN, 3):
        acc0 = acc0 + w3[:, k:k + 1] * h2[k:k + 1, :]
        acc1 = acc1 + w3[:, k + 1:k + 2] * h2[k + 1:k + 2, :]
        acc2 = acc2 + w3[:, k + 2:k + 3] * h2[k + 2:k + 3, :]

    o_ref[...] = (acc0 + (acc1 + acc2)).astype(o_ref.dtype)  # lane-dense store


def net_forward_fb(x_fb, params, *, block_b=_DEFAULT_BLOCK_B):
    """Features-major forward pass: x_fb (N_STATES, B) -> (N_ACTIONS, B).

    Preferred entry point: keep RL state/replay buffers in (features, batch)
    layout end-to-end and no transposes are needed on either side.
    """
    w1, b1, w2, b2, w3, b3 = params
    # bf16 MXU weights; no-op if prepare_params() was already applied.
    w1 = w1.astype(jnp.bfloat16)
    w2 = w2.astype(jnp.bfloat16)

    batch = x_fb.shape[1]
    bb = _choose_block(batch, block_b)
    n_steps = pl.cdiv(batch, bb)
    padded = n_steps * bb
    if padded != batch:
        # Padded columns produce values that are sliced off below; they never
        # feed a cross-batch reduction, so garbage there is harmless.
        x_fb = jnp.pad(x_fb, ((0, 0), (0, padded - batch)))

    def resident(i):  # params DMA'd once and kept VMEM-resident
        return (0, 0)

    out = pl.pallas_call(
        _mlp_kernel,
        out_shape=jax.ShapeDtypeStruct((N_ACTIONS, padded), jnp.float32),
        grid=(n_steps,),
        in_specs=[
            pl.BlockSpec((N_STATES, bb), lambda i: (0, i)),   # x block
            pl.BlockSpec((N_HIDDEN, N_STATES), resident),     # w1 (bf16)
            pl.BlockSpec((N_HIDDEN, 1), resident),            # b1
            pl.BlockSpec((N_HIDDEN, N_HIDDEN), resident),     # w2 (bf16)
            pl.BlockSpec((N_HIDDEN, 1), resident),            # b2
            pl.BlockSpec((N_ACTIONS, N_HIDDEN), resident),    # w3
            pl.BlockSpec((N_ACTIONS, 1), resident),           # b3
        ],
        out_specs=pl.BlockSpec((N_ACTIONS, bb), lambda i: (0, i)),
        compiler_params=pltpu.CompilerParams(
            dimension_semantics=("parallel",)),
    )(x_fb, w1, b1, w2, b2, w3, b3)

    return out[:, :batch] if padded != batch else out


def net_forward(x, params, *, block_b=_DEFAULT_BLOCK_B):
    """PyTorch-layout compatibility wrapper: (B, N_STATES) -> (B, N_ACTIONS).

    The two transposes are layout plumbing only; run this under jax.jit (as in
    __main__) so they fuse with the pad/cast, or use net_forward_fb to avoid
    them entirely.
    """
    return jnp.transpose(net_forward_fb(jnp.transpose(x), params, block_b=block_b))


def init_params(key):
    """Deterministic init matching the PyTorch module (f32, (out, in) weights).

    Weights ~ Normal(0, 0.1); biases use PyTorch's default Linear init,
    Uniform(-1/sqrt(fan_in), 1/sqrt(fan_in)), stored as (out_features, 1).
    """
    k = jax.random.split(key, 6)

    def w(kk, fan_out, fan_in):
        return (0.1 * jax.random.normal(kk, (fan_out, fan_in))).astype(jnp.float32)

    def b(kk, fan_out, fan_in):
        bound = 1.0 / jnp.sqrt(jnp.float32(fan_in))
        return jax.random.uniform(
            kk, (fan_out, 1), minval=-bound, maxval=bound
        ).astype(jnp.float32)

    w1 = w(k[0], N_HIDDEN, N_STATES)
    b1 = b(k[1], N_HIDDEN, N_STATES)
    w2 = w(k[2], N_HIDDEN, N_HIDDEN)
    b2 = b(k[3], N_HIDDEN, N_HIDDEN)
    w3 = w(k[4], N_ACTIONS, N_HIDDEN)
    b3 = b(k[5], N_ACTIONS, N_HIDDEN)
    return (w1, b1, w2, b2, w3, b3)


def prepare_params(params):
    """One-time prep for the kernel: cast the two MXU weights to bf16."""
    w1, b1, w2, b2, w3, b3 = params
    return (w1.astype(jnp.bfloat16), b1, w2.astype(jnp.bfloat16), b2, w3, b3)


def net_forward_ref(x, params):
    """Pure-JAX f32 reference (standard (B, features) layout)."""
    w1, b1, w2, b2, w3, b3 = params
    h1 = jnp.maximum(x @ w1.T + b1.T, 0.0)
    h2 = jnp.maximum(h1 @ w2.T + b2.T, 0.0)
    return h2 @ w3.T + b3.T


if __name__ == "__main__":
    key = jax.random.PRNGKey(0)
    pkey, xkey, xkey2 = jax.random.split(key, 3)
    params = init_params(pkey)       # f32, module semantics (used by the ref)
    kparams = prepare_params(params)  # kernel-ready (bf16 MXU weights)

    fwd = jax.jit(net_forward)

    # Small batch: single 128-lane block, padded batch columns exercised.
    x_small = jax.random.normal(xkey, (8, N_STATES), dtype=jnp.float32)
    out_small = jax.block_until_ready(fwd(x_small, kparams))
    ref_small = net_forward_ref(x_small, params)
    assert out_small.shape == (8, N_ACTIONS)
    assert jnp.allclose(out_small, ref_small, atol=2e-2, rtol=2e-2)

    # Medium batch: forces >= 2 grid steps (v7x two-core path) plus a padded
    # tail block.
    x_med = jax.random.normal(xkey2, (384, N_STATES), dtype=jnp.float32)
    out_med = jax.block_until_ready(fwd(x_med, kparams))
    ref_med = net_forward_ref(x_med, params)
    assert out_med.shape == (384, N_ACTIONS)
    assert jnp.allclose(out_med, ref_med, atol=2e-2, rtol=2e-2)

    print("KERNEL_OK")
</pallas_src>

<mosaic_0001>
module attributes {stable_mosaic.version = 11 : i64} {
  func.func @_mlp_kernel(%arg0: i32, %arg1: memref<5x128xf32, #tpu.memory_space<vmem>>, %arg2: memref<15x5xbf16, #tpu.memory_space<vmem>>, %arg3: memref<15x1xf32, #tpu.memory_space<vmem>>, %arg4: memref<15x15xbf16, #tpu.memory_space<vmem>>, %arg5: memref<15x1xf32, #tpu.memory_space<vmem>>, %arg6: memref<3x15xf32, #tpu.memory_space<vmem>>, %arg7: memref<3x1xf32, #tpu.memory_space<vmem>>, %arg8: memref<3x128xf32, #tpu.memory_space<vmem>>) attributes {dimension_semantics = [#tpu.dimension_semantics<parallel>], iteration_bounds = array<i64: 1>, scalar_prefetch = 0 : i64, scratch_operands = 0 : i64, tpu.core_type = #tpu.core_type<tc>, window_params = [{transform_indices = @transform_0, window_bounds = array<i64: 5, 128>}, {pipeline_mode = #tpu.pipeline_mode<synchronous>, transform_indices = @transform_1, window_bounds = array<i64: 15, 5>}, {pipeline_mode = #tpu.pipeline_mode<synchronous>, transform_indices = @transform_2, window_bounds = array<i64: 15, 1>}, {pipeline_mode = #tpu.pipeline_mode<synchronous>, transform_indices = @transform_3, window_bounds = array<i64: 15, 15>}, {pipeline_mode = #tpu.pipeline_mode<synchronous>, transform_indices = @transform_4, window_bounds = array<i64: 15, 1>}, {pipeline_mode = #tpu.pipeline_mode<synchronous>, transform_indices = @transform_5, window_bounds = array<i64: 3, 15>}, {pipeline_mode = #tpu.pipeline_mode<synchronous>, transform_indices = @transform_6, window_bounds = array<i64: 3, 1>}, {transform_indices = @transform_7, window_bounds = array<i64: 3, 128>}]} {
    %c0 = arith.constant 0 : index
    %c0_0 = arith.constant 0 : index
    %0 = vector.load %arg1[%c0, %c0_0] : memref<5x128xf32, #tpu.memory_space<vmem>>, vector<5x128xf32>
    %1 = arith.truncf %0 : vector<5x128xf32> to vector<5x128xbf16>
    %c0_1 = arith.constant 0 : index
    %c0_2 = arith.constant 0 : index
    %2 = vector.load %arg2[%c0_1, %c0_2] : memref<15x5xbf16, #tpu.memory_space<vmem>>, vector<15x5xbf16>
    %cst = arith.constant dense<0.000000e+00> : vector<15x128xf32>
    %3 = tpu.matmul %2, %1, %cst {dimension_numbers = #tpu.dot_dimension_numbers<[1], [0], [0], [1], [0, 0, 1, 1], [], []>} : vector<15x5xbf16>, vector<5x128xbf16>, vector<15x128xf32> -> vector<15x128xf32>
    %c0_3 = arith.constant 0 : index
    %c0_4 = arith.constant 0 : index
    %4 = vector.load %arg3[%c0_3, %c0_4] : memref<15x1xf32, #tpu.memory_space<vmem>>, vector<15x1xf32>
    %5 = vector.broadcast %4 : vector<15x1xf32> to vector<15x128xf32>
    %6 = arith.addf %3, %5 : vector<15x128xf32>
    %cst_5 = arith.constant 0.000000e+00 : f32
    %7 = vector.broadcast %cst_5 : f32 to vector<15x128xf32>
    %8 = arith.maximumf %6, %7 : vector<15x128xf32>
    %9 = arith.truncf %8 : vector<15x128xf32> to vector<15x128xbf16>
    %c0_6 = arith.constant 0 : index
    %c0_7 = arith.constant 0 : index
    %10 = vector.load %arg4[%c0_6, %c0_7] : memref<15x15xbf16, #tpu.memory_space<vmem>>, vector<15x15xbf16>
    %cst_8 = arith.constant dense<0.000000e+00> : vector<15x128xf32>
    %11 = tpu.matmul %10, %9, %cst_8 {dimension_numbers = #tpu.dot_dimension_numbers<[1], [0], [0], [1], [0, 0, 1, 1], [], []>} : vector<15x15xbf16>, vector<15x128xbf16>, vector<15x128xf32> -> vector<15x128xf32>
    %c0_9 = arith.constant 0 : index
    %c0_10 = arith.constant 0 : index
    %12 = vector.load %arg5[%c0_9, %c0_10] : memref<15x1xf32, #tpu.memory_space<vmem>>, vector<15x1xf32>
    %13 = vector.broadcast %12 : vector<15x1xf32> to vector<15x128xf32>
    %14 = arith.addf %11, %13 : vector<15x128xf32>
    %cst_11 = arith.constant 0.000000e+00 : f32
    %15 = vector.broadcast %cst_11 : f32 to vector<15x128xf32>
    %16 = arith.maximumf %14, %15 : vector<15x128xf32>
    %c0_12 = arith.constant 0 : index
    %c0_13 = arith.constant 0 : index
    %17 = vector.load %arg6[%c0_12, %c0_13] : memref<3x15xf32, #tpu.memory_space<vmem>>, vector<3x15xf32>
    %c0_14 = arith.constant 0 : index
    %c0_15 = arith.constant 0 : index
    %18 = vector.load %arg7[%c0_14, %c0_15] : memref<3x1xf32, #tpu.memory_space<vmem>>, vector<3x1xf32>
    %19 = vector.extract_strided_slice %17 {offsets = [0, 0], sizes = [3, 1], strides = [1, 1]} : vector<3x15xf32> to vector<3x1xf32>
    %20 = vector.extract_strided_slice %16 {offsets = [0, 0], sizes = [1, 128], strides = [1, 1]} : vector<15x128xf32> to vector<1x128xf32>
    %21 = vector.broadcast %19 : vector<3x1xf32> to vector<3x128xf32>
    %22 = vector.broadcast %20 : vector<1x128xf32> to vector<3x128xf32>
    %23 = arith.mulf %21, %22 : vector<3x128xf32>
    %24 = vector.broadcast %18 : vector<3x1xf32> to vector<3x128xf32>
    %25 = arith.addf %24, %23 : vector<3x128xf32>
    %26 = vector.extract_strided_slice %17 {offsets = [0, 1], sizes = [3, 1], strides = [1, 1]} : vector<3x15xf32> to vector<3x1xf32>
    %27 = vector.extract_strided_slice %16 {offsets = [1, 0], sizes = [1, 128], strides = [1, 1]} : vector<15x128xf32> to vector<1x128xf32>
    %28 = vector.broadcast %26 : vector<3x1xf32> to vector<3x128xf32>
    %29 = vector.broadcast %27 : vector<1x128xf32> to vector<3x128xf32>
    %30 = arith.mulf %28, %29 : vector<3x128xf32>
    %31 = vector.extract_strided_slice %17 {offsets = [0, 2], sizes = [3, 1], strides = [1, 1]} : vector<3x15xf32> to vector<3x1xf32>
    %32 = vector.extract_strided_slice %16 {offsets = [2, 0], sizes = [1, 128], strides = [1, 1]} : vector<15x128xf32> to vector<1x128xf32>
    %33 = vector.broadcast %31 : vector<3x1xf32> to vector<3x128xf32>
    %34 = vector.broadcast %32 : vector<1x128xf32> to vector<3x128xf32>
    %35 = arith.mulf %33, %34 : vector<3x128xf32>
    %36 = vector.extract_strided_slice %17 {offsets = [0, 3], sizes = [3, 1], strides = [1, 1]} : vector<3x15xf32> to vector<3x1xf32>
    %37 = vector.extract_strided_slice %16 {offsets = [3, 0], sizes = [1, 128], strides = [1, 1]} : vector<15x128xf32> to vector<1x128xf32>
    %38 = vector.broadcast %36 : vector<3x1xf32> to vector<3x128xf32>
    %39 = vector.broadcast %37 : vector<1x128xf32> to vector<3x128xf32>
    %40 = arith.mulf %38, %39 : vector<3x128xf32>
    %41 = arith.addf %25, %40 : vector<3x128xf32>
    %42 = vector.extract_strided_slice %17 {offsets = [0, 4], sizes = [3, 1], strides = [1, 1]} : vector<3x15xf32> to vector<3x1xf32>
    %43 = vector.extract_strided_slice %16 {offsets = [4, 0], sizes = [1, 128], strides = [1, 1]} : vector<15x128xf32> to vector<1x128xf32>
    %44 = vector.broadcast %42 : vector<3x1xf32> to vector<3x128xf32>
    %45 = vector.broadcast %43 : vector<1x128xf32> to vector<3x128xf32>
    %46 = arith.mulf %44, %45 : vector<3x128xf32>
    %47 = arith.addf %30, %46 : vector<3x128xf32>
    %48 = vector.extract_strided_slice %17 {offsets = [0, 5], sizes = [3, 1], strides = [1, 1]} : vector<3x15xf32> to vector<3x1xf32>
    %49 = vector.extract_strided_slice %16 {offsets = [5, 0], sizes = [1, 128], strides = [1, 1]} : vector<15x128xf32> to vector<1x128xf32>
    %50 = vector.broadcast %48 : vector<3x1xf32> to vector<3x128xf32>
    %51 = vector.broadcast %49 : vector<1x128xf32> to vector<3x128xf32>
    %52 = arith.mulf %50, %51 : vector<3x128xf32>
    %53 = arith.addf %35, %52 : vector<3x128xf32>
    %54 = vector.extract_strided_slice %17 {offsets = [0, 6], sizes = [3, 1], strides = [1, 1]} : vector<3x15xf32> to vector<3x1xf32>
    %55 = vector.extract_strided_slice %16 {offsets = [6, 0], sizes = [1, 128], strides = [1, 1]} : vector<15x128xf32> to vector<1x128xf32>
    %56 = vector.broadcast %54 : vector<3x1xf32> to vector<3x128xf32>
    %57 = vector.broadcast %55 : vector<1x128xf32> to vector<3x128xf32>
    %58 = arith.mulf %56, %57 : vector<3x128xf32>
    %59 = arith.addf %41, %58 : vector<3x128xf32>
    %60 = vector.extract_strided_slice %17 {offsets = [0, 7], sizes = [3, 1], strides = [1, 1]} : vector<3x15xf32> to vector<3x1xf32>
    %61 = vector.extract_strided_slice %16 {offsets = [7, 0], sizes = [1, 128], strides = [1, 1]} : vector<15x128xf32> to vector<1x128xf32>
    %62 = vector.broadcast %60 : vector<3x1xf32> to vector<3x128xf32>
    %63 = vector.broadcast %61 : vector<1x128xf32> to vector<3x128xf32>
    %64 = arith.mulf %62, %63 : vector<3x128xf32>
    %65 = arith.addf %47, %64 : vector<3x128xf32>
    %66 = vector.extract_strided_slice %17 {offsets = [0, 8], sizes = [3, 1], strides = [1, 1]} : vector<3x15xf32> to vector<3x1xf32>
    %67 = vector.extract_strided_slice %16 {offsets = [8, 0], sizes = [1, 128], strides = [1, 1]} : vector<15x128xf32> to vector<1x128xf32>
    %68 = vector.broadcast %66 : vector<3x1xf32> to vector<3x128xf32>
    %69 = vector.broadcast %67 : vector<1x128xf32> to vector<3x128xf32>
    %70 = arith.mulf %68, %69 : vector<3x128xf32>
    %71 = arith.addf %53, %70 : vector<3x128xf32>
    %72 = vector.extract_strided_slice %17 {offsets = [0, 9], sizes = [3, 1], strides = [1, 1]} : vector<3x15xf32> to vector<3x1xf32>
    %73 = vector.extract_strided_slice %16 {offsets = [9, 0], sizes = [1, 128], strides = [1, 1]} : vector<15x128xf32> to vector<1x128xf32>
    %74 = vector.broadcast %72 : vector<3x1xf32> to vector<3x128xf32>
    %75 = vector.broadcast %73 : vector<1x128xf32> to vector<3x128xf32>
    %76 = arith.mulf %74, %75 : vector<3x128xf32>
    %77 = arith.addf %59, %76 : vector<3x128xf32>
    %78 = vector.extract_strided_slice %17 {offsets = [0, 10], sizes = [3, 1], strides = [1, 1]} : vector<3x15xf32> to vector<3x1xf32>
    %79 = vector.extract_strided_slice %16 {offsets = [10, 0], sizes = [1, 128], strides = [1, 1]} : vector<15x128xf32> to vector<1x128xf32>
    %80 = vector.broadcast %78 : vector<3x1xf32> to vector<3x128xf32>
    %81 = vector.broadcast %79 : vector<1x128xf32> to vector<3x128xf32>
    %82 = arith.mulf %80, %81 : vector<3x128xf32>
    %83 = arith.addf %65, %82 : vector<3x128xf32>
    %84 = vector.extract_strided_slice %17 {offsets = [0, 11], sizes = [3, 1], strides = [1, 1]} : vector<3x15xf32> to vector<3x1xf32>
    %85 = vector.extract_strided_slice %16 {offsets = [11, 0], sizes = [1, 128], strides = [1, 1]} : vector<15x128xf32> to vector<1x128xf32>
    %86 = vector.broadcast %84 : vector<3x1xf32> to vector<3x128xf32>
    %87 = vector.broadcast %85 : vector<1x128xf32> to vector<3x128xf32>
    %88 = arith.mulf %86, %87 : vector<3x128xf32>
    %89 = arith.addf %71, %88 : vector<3x128xf32>
    %90 = vector.extract_strided_slice %17 {offsets = [0, 12], sizes = [3, 1], strides = [1, 1]} : vector<3x15xf32> to vector<3x1xf32>
    %91 = vector.extract_strided_slice %16 {offsets = [12, 0], sizes = [1, 128], strides = [1, 1]} : vector<15x128xf32> to vector<1x128xf32>
    %92 = vector.broadcast %90 : vector<3x1xf32> to vector<3x128xf32>
    %93 = vector.broadcast %91 : vector<1x128xf32> to vector<3x128xf32>
    %94 = arith.mulf %92, %93 : vector<3x128xf32>
    %95 = arith.addf %77, %94 : vector<3x128xf32>
    %96 = vector.extract_strided_slice %17 {offsets = [0, 13], sizes = [3, 1], strides = [1, 1]} : vector<3x15xf32> to vector<3x1xf32>
    %97 = vector.extract_strided_slice %16 {offsets = [13, 0], sizes = [1, 128], strides = [1, 1]} : vector<15x128xf32> to vector<1x128xf32>
    %98 = vector.broadcast %96 : vector<3x1xf32> to vector<3x128xf32>
    %99 = vector.broadcast %97 : vector<1x128xf32> to vector<3x128xf32>
    %100 = arith.mulf %98, %99 : vector<3x128xf32>
    %101 = arith.addf %83, %100 : vector<3x128xf32>
    %102 = vector.extract_strided_slice %17 {offsets = [0, 14], sizes = [3, 1], strides = [1, 1]} : vector<3x15xf32> to vector<3x1xf32>
    %103 = vector.extract_strided_slice %16 {offsets = [14, 0], sizes = [1, 128], strides = [1, 1]} : vector<15x128xf32> to vector<1x128xf32>
    %104 = vector.broadcast %102 : vector<3x1xf32> to vector<3x128xf32>
    %105 = vector.broadcast %103 : vector<1x128xf32> to vector<3x128xf32>
    %106 = arith.mulf %104, %105 : vector<3x128xf32>
    %107 = arith.addf %89, %106 : vector<3x128xf32>
    %108 = arith.addf %101, %107 : vector<3x128xf32>
    %109 = arith.addf %95, %108 : vector<3x128xf32>
    %c0_16 = arith.constant 0 : index
    %c0_17 = arith.constant 0 : index
    %110 = vector.load %arg8[%c0_16, %c0_17] : memref<3x128xf32, #tpu.memory_space<vmem>>, vector<3x128xf32>
    tpu.vector_store %arg8[%c0_16, %c0_17], %109 {strides = array<i32>} : memref<3x128xf32, #tpu.memory_space<vmem>>, vector<3x128xf32>,
    return
  }
  func.func @transform_0(%arg0: i32) -> (i32, i32) {
    %c0_i32 = arith.constant 0 : i32
    %c0_i32_0 = arith.constant 0 : i32
    return %c0_i32, %arg0 : i32, i32
  }
  func.func @transform_1(%arg0: i32) -> (i32, i32) {
    %c0_i32 = arith.constant 0 : i32
    %c0_i32_0 = arith.constant 0 : i32
    %c0_i32_1 = arith.constant 0 : i32
    return %c0_i32, %c0_i32_0 : i32, i32
  }
  func.func @transform_2(%arg0: i32) -> (i32, i32) {
    %c0_i32 = arith.constant 0 : i32
    %c0_i32_0 = arith.constant 0 : i32
    %c0_i32_1 = arith.constant 0 : i32
    return %c0_i32, %c0_i32_0 : i32, i32
  }
  func.func @transform_3(%arg0: i32) -> (i32, i32) {
    %c0_i32 = arith.constant 0 : i32
    %c0_i32_0 = arith.constant 0 : i32
    %c0_i32_1 = arith.constant 0 : i32
    return %c0_i32, %c0_i32_0 : i32, i32
  }
  func.func @transform_4(%arg0: i32) -> (i32, i32) {
    %c0_i32 = arith.constant 0 : i32
    %c0_i32_0 = arith.constant 0 : i32
    %c0_i32_1 = arith.constant 0 : i32
    return %c0_i32, %c0_i32_0 : i32, i32
  }
  func.func @transform_5(%arg0: i32) -> (i32, i32) {
    %c0_i32 = arith.constant 0 : i32
    %c0_i32_0 = arith.constant 0 : i32
    %c0_i32_1 = arith.constant 0 : i32
    return %c0_i32, %c0_i32_0 : i32, i32
  }
  func.func @transform_6(%arg0: i32) -> (i32, i32) {
    %c0_i32 = arith.constant 0 : i32
    %c0_i32_0 = arith.constant 0 : i32
    %c0_i32_1 = arith.constant 0 : i32
    return %c0_i32, %c0_i32_0 : i32, i32
  }
  func.func @transform_7(%arg0: i32) -> (i32, i32) {
    %c0_i32 = arith.constant 0 : i32
    %c0_i32_0 = arith.constant 0 : i32
    return %c0_i32, %arg0 : i32, i32
  }
}

</mosaic_0001>

<bundles_post_ra>
// kernel: net_forward.1
= control target key start
LH: loop header
LB: loop body
LE: loop exit
PB: predicated region body
PF: predicated region fallthrough
CT: control target
= control target key end

     0   :  { %vm52_vm0 = vcmask 1041408   ;;  %vm53_vm1 = vcmask 1042432   ;;  %v396_v0 = vmov 0.0   ;;  %v397_v2 = vmov 65535   ;;  %s486_s0 = inlined_call_operand.vmem [shape: f32[5,128], index: 0, kind: input, shape index: {}]   ;;  %s487_s1 = inlined_call_operand.vmem [shape: bf16[15,5], index: 1, kind: input, shape index: {}]   ;;  %s488_s2 = inlined_call_operand.vmem [shape: f32[15,1], index: 2, kind: input, shape index: {}]   ;;  %s489_s3 = inlined_call_operand.vmem [shape: bf16[15,15], index: 3, kind: input, shape index: {}]   ;;  %s490_s4 = inlined_call_operand.vmem [shape: f32[15,1], index: 4, kind: input, shape index: {}]   ;;  %s491_s5 = inlined_call_operand.vmem [shape: f32[3,15], index: 5, kind: input, shape index: {}]   ;;  %s492_s6 = inlined_call_operand.vmem [shape: f32[3,1], index: 6, kind: input, shape index: {}]   ;;  %s493_s7 = inlined_call_operand.vmem [shape: f32[3,128], index: 7, kind: output, shape index: {}]  }
   0x1   :  { %347 = vmatprep.subr.bf16.mxu0 %v396_v0  ;;  %v27_v1 = vld [vmem:[%s486_s0] sm:$0x1f]  ;;  %v54_v3 = vsel %vm52_vm0, 4294967295, %v397_v2  ;;  %353 = vmatprep.subr.bf16.mxu1 %v396_v0  ;;  %vm398_vm2 = vmmov 0   ;;  %v399_v6 = vmov 0   ;;  %vm48_vm3 = vcmask 39936  }
   0x2   :  { %v28_v4 = vpack.c.bf16 %v27_v1, %v27_v1  ;;  %v55_v5 = vsel %vm53_vm1, %v54_v3, 0  ;;  %349 = vmatprep.mubr.msk.bf16.mxu0 %vm398_vm2, %v396_v0  ;;  %355 = vmatprep.mubr.msk.bf16.mxu1 %vm398_vm2, %v396_v0  ;;  %v31_v7 = vld [vmem:[%s488_s2] sm:$0xff]  ;;  %v32_v10 = vld [vmem:[%s488_s2 + $0x8] sm:$0x7f]  ;;  %v400_v14 = vmov 2   ;;  %v401_v15 = vmov 1  }
   0x3   :  { %377 = vset.pattern.permute.xlu0 %v399_v6  ;;  %378 = vset.pattern.permute.xlu1 %v399_v6  ;;  %v394_v9 = vld [vmem:[%s487_s1] sm:$0xff]   ;;  %v106_v12 = vld [vmem:[%s490_s4 + $0x8] sm:$0x7f]  ;;  %v402_v17 = vmov 4   ;;  %v403_v18 = vmov 8   ;;  %v404_v19 = vmov 5   ;;  %v183_v54 = vlaneseq }
   0x4   :  { %v57_v8 = vand.u32 %v55_v5, %v28_v4  ;;  %35 = vperm.xlu0 %377, %v31_v7   ;;  %v105_v11 = vld [vmem:[%s490_s4] sm:$0xff]  ;;  %v405_v20 = vmov 11   ;;  %v406_v21 = vmov 3   ;;  %v407_v22 = vmov 14  }
   0x5   :  { %109 = vperm.xlu1 %378, %v105_v11   ;;  %v176_v13 = vld [vmem:[%s491_s5] sm:$0x7]  ;;  %v408_v23 = vmov 7   ;;  %v409_v24 = vmov 6   ;;  %v410_v25 = vmov 10   ;;  %v411_v26 = vmov 9  }
   0x6   :  { %348 = vmatpush3.bf16.msra.mxu0 %v57_v8  ;;  %v177_v16 = vld [vmem:[%s492_s6] sm:$0x7]  ;;  %v412_v27 = vmov 13   ;;  %v413_v28 = vmov 12   ;;  %vm126_vm4 = vcmask 1046528   ;;  %vm127_vm5 = vcmask 1047552  }
   0x7   :  { %v128_v37 = vsel %vm126_vm4, 4294967295, %v397_v2  ;;  %v395_v43 = vld [vmem:[%s489_s3] sm:$0xff]   ;;  %vm122_vm6 = vcmask 121856   ;;  %v184_v57 = vshrl.u32 %v183_v54, 7 }
   0x8   :  { %40 = vperm.xlu0 %377, %v32_v10   ;;  %v129_v40 = vsel %vm127_vm5, %v128_v37, 0 }
   0x9   :  { %350 = vmatmul.mubr.msk.bf16.vlgmr.msra.gmra.mrb[0].mxu0 %vm48_vm3, %v394_v9  ;;  %114 = vperm.xlu1 %378, %v106_v12   ;;  %v200_v62 = vsub.s32 1, %v184_v57  ;;  %v228_v63 = vsub.s32 4, %v184_v57  ;;  %v238_v0 = vsub.s32 5, %v184_v57  ;;  %v209_v2 = vsub.s32 2, %v184_v57 }
   0xa   :  { %v258_v3 = vsub.s32 7, %v184_v57  ;;  %v185_v4 = vsub.s32 0, %v184_v57  ;;  %v218_v9 = vsub.s32 3, %v184_v57 }
   0xc   :  { %380 = vset.pattern.permute.xlu0 %v400_v14 }
   0xd   :  { %204 = vperm.xlu0 %380, %v176_v13   ;;  %379 = vset.pattern.permute.xlu1 %v401_v15 }
   0xe   :  { %195 = vperm.xlu1 %379, %v176_v13  }
  0x11   :  { %381 = vset.pattern.permute.xlu0 %v399_v6 }
  0x12   :  { %180 = vperm.xlu0 %381, %v176_v13   ;;  %382 = vset.pattern.permute.xlu1 %v402_v17 }
  0x13   :  { %223 = vperm.xlu1 %382, %v176_v13  }
  0x16   :  { %190 = vperm.xlu0 %381, %v177_v16  }
  0x17   :  { %383 = vset.pattern.permute.xlu1 %v404_v19 }
  0x18   :  { %233 = vperm.xlu1 %383, %v176_v13  }
  0x1a   :  { %386 = vset.pattern.permute.xlu0 %v403_v18  ;;  %v248_v18 = vsub.s32 6, %v184_v57 }
  0x1b   :  { %263 = vperm.xlu0 %386, %v176_v13  }
  0x1c   :  { %384 = vset.pattern.permute.xlu1 %v406_v21 }
  0x1d   :  { %213 = vperm.xlu1 %384, %v176_v13  }
  0x1f   :  { %389 = vset.pattern.permute.xlu0 %v405_v20 }
  0x20   :  { %293 = vperm.xlu0 %389, %v176_v13  }
  0x21   :  { %385 = vset.pattern.permute.xlu1 %v408_v23 }
  0x22   :  { %253 = vperm.xlu1 %385, %v176_v13  }
  0x24   :  { %392 = vset.pattern.permute.xlu0 %v407_v22 }
  0x25   :  { %323 = vperm.xlu0 %392, %v176_v13  }
  0x26   :  { %387 = vset.pattern.permute.xlu1 %v409_v24 }
  0x27   :  { %243 = vperm.xlu1 %387, %v176_v13  }
  0x2b   :  { %388 = vset.pattern.permute.xlu1 %v410_v25 }
  0x2c   :  { %283 = vperm.xlu1 %388, %v176_v13  }
  0x30   :  { %390 = vset.pattern.permute.xlu1 %v411_v26 }
  0x31   :  { %273 = vperm.xlu1 %390, %v176_v13  }
  0x35   :  { %391 = vset.pattern.permute.xlu1 %v412_v27 }
  0x36   :  { %313 = vperm.xlu1 %391, %v176_v13  }
  0x3a   :  { %393 = vset.pattern.permute.xlu1 %v413_v28 }
  0x3b   :  { %303 = vperm.xlu1 %393, %v176_v13  }
  0x83   :  { %v36_v29 = vpop.permute.xlu0 %35 }
  0x84   :  { %v110_v44 = vpop.permute.xlu1 %109 }
  0x87   :  { %v41_v33 = vpop.permute.xlu0 %40 }
  0x88   :  { %v115_v45 = vpop.permute.xlu1 %114 }
  0x8c   :  { %v205_v50 = vpop.permute.xlu0 %204 }
  0x8d   :  { %v196_v46 = vpop.permute.xlu1 %195 }
  0x91   :  { %v181_v52 = vpop.permute.xlu0 %180 }
  0x92   :  { %v224_v47 = vpop.permute.xlu1 %223 }
  0x95   :  { %v191_v55 = vpop.permute.xlu0 %190 }
  0x97   :  { %v234_v48 = vpop.permute.xlu1 %233 }
  0x9a   :  { %v264_v58 = vpop.permute.xlu0 %263 }
  0x9c   :  { %v214_v49 = vpop.permute.xlu1 %213 }
  0x9f   :  { %v294_v15 = vpop.permute.xlu0 %293 }
  0xa1   :  { %v254_v51 = vpop.permute.xlu1 %253 }
  0xa6   :  { %v244_v53 = vpop.permute.xlu1 %243 }
  0xab   :  { %v284_v56 = vpop.permute.xlu1 %283 }
  0xb0   :  { %v274_v5 = vpop.permute.xlu1 %273 }
  0xb5   :  { %v314_v25 = vpop.permute.xlu1 %313 }
  0xba   :  { %v304_v54 = vpop.permute.xlu1 %303 }
  0xdc   :  { %v93_v30 = vpop.f32.mrb[0].mxu0 }
  0xdd   :  { %v94_v31 = vadd.f32 %v93_v30, %v36_v29  ;;  %v351_v32 = vpop.f32.mrb[1].mxu0 }
  0xde   :  { %v96_v34 = vpop.f32.mrb[2].mxu0 }
  0xdf   :  { %v97_v35 = vadd.f32 %v96_v34, %v41_v33  ;;  %v352_v36 = vpop.f32.mrb[3].mxu0  ;;  %v100_v38 = vmax.f32 %v94_v31, 0.0 }
  0xe1   :  { %v101_v39 = vmax.f32 %v97_v35, 0.0 }
  0xe3   :  { %v102_v41 = vpack.c.bf16 %v101_v39, %v100_v38 }
  0xe5   :  { %v131_v42 = vand.u32 %v129_v40, %v102_v41  ;;  %v324_v40 = vpop.permute.xlu0 %323 }
  0xe7   :  { %354 = vmatpush3.bf16.msra.mxu1 %v131_v42 }
  0xea   :  { %356 = vmatmul.mubr.msk.bf16.vlgmr.msra.gmra.mrb[0].mxu1 %vm122_vm6, %v395_v43 }
 0x1bd   :  { %v167_v59 = vpop.f32.mrb[0].mxu1 }
 0x1be   :  { %v168_v60 = vadd.f32 %v167_v59, %v110_v44  ;;  %v357_v61 = vpop.f32.mrb[1].mxu1 }
 0x1bf   :  { %v170_v1 = vpop.f32.mrb[2].mxu1 }
 0x1c0   :  { %v174_v6 = vmax.f32 %v168_v60, 0.0  ;;  %v171_v7 = vadd.f32 %v170_v1, %v115_v45  ;;  %v358_v8 = vpop.f32.mrb[3].mxu1 }
 0x1c2   :  { %v175_v10 = vmax.f32 %v171_v7, 0.0  ;;  %v201_v11 = vrot.slane %v174_v6, %v200_v62  ;;  %v229_v12 = vrot.slane %v174_v6, %v228_v63  ;;  %v239_v13 = vrot.slane %v174_v6, %v238_v0 }
 0x1c3   :  { %v259_v14 = vrot.slane %v174_v6, %v258_v3  ;;  %v186_v16 = vrot.slane %v174_v6, %v185_v4  ;;  %v210_v17 = vrot.slane %v174_v6, %v209_v2  ;;  %v219_v23 = vrot.slane %v174_v6, %v218_v9 }
 0x1c4   :  { %v202_v19 = vmul.f32 %v201_v11, %v196_v46  ;;  %v230_v20 = vmul.f32 %v229_v12, %v224_v47  ;;  %v289_v21 = vrot.slane %v175_v10, %v209_v2  ;;  %v240_v24 = vmul.f32 %v239_v13, %v234_v48 }
 0x1c5   :  { %v211_v22 = vmul.f32 %v210_v17, %v205_v50  ;;  %v260_v27 = vmul.f32 %v259_v14, %v254_v51  ;;  %v319_v28 = vrot.slane %v175_v10, %v238_v0  ;;  %v269_v29 = vrot.slane %v175_v10, %v185_v4 }
 0x1c6   :  { %v231_v26 = vadd.f32 %v230_v20, %v202_v19  ;;  %v299_v31 = vrot.slane %v175_v10, %v218_v9  ;;  %v187_v32 = vmul.f32 %v186_v16, %v181_v52  ;;  %v249_v33 = vrot.slane %v174_v6, %v248_v18 }
 0x1c7   :  { %v241_v30 = vadd.f32 %v240_v24, %v211_v22  ;;  %v290_v35 = vmul.f32 %v289_v21, %v284_v56  ;;  %v270_v36 = vmul.f32 %v269_v29, %v264_v58  ;;  %v220_v37 = vmul.f32 %v219_v23, %v214_v49 }
 0x1c8   :  { %v261_v34 = vadd.f32 %v260_v27, %v231_v26  ;;  %v193_v38 = vadd.f32 %v191_v55, %v187_v32  ;;  %v279_v39 = vrot.slane %v175_v10, %v200_v62  ;;  %v329_v41 = vrot.slane %v175_v10, %v248_v18 }
 0x1c9   :  { %v320_v43 = vmul.f32 %v319_v28, %v314_v25  ;;  %v271_v44 = vadd.f32 %v270_v36, %v241_v30  ;;  %v300_v45 = vmul.f32 %v299_v31, %v294_v15  ;;  %v250_v47 = vmul.f32 %v249_v33, %v244_v53 }
 0x1ca   :  { %v291_v42 = vadd.f32 %v290_v35, %v261_v34  ;;  %v221_v46 = vadd.f32 %v220_v37, %v193_v38  ;;  %v309_v48 = vrot.slane %v175_v10, %v228_v63  ;;  %v330_v52 = vmul.f32 %v329_v41, %v324_v40 }
 0x1cb   :  { %v301_v51 = vadd.f32 %v300_v45, %v271_v44  ;;  %v280_v59 = vmul.f32 %v279_v39, %v274_v5 }
 0x1cc   :  { %v321_v50 = vadd.f32 %v320_v43, %v291_v42  ;;  %v251_v57 = vadd.f32 %v250_v47, %v221_v46  ;;  %v310_v49 = vmul.f32 %v309_v48, %v304_v54 }
 0x1cd   :  { %v331_v56 = vadd.f32 %v330_v52, %v301_v51 }
 0x1ce   :  { %v281_v58 = vadd.f32 %v280_v59, %v251_v57 }
 0x1cf   :  { %v332_v55 = vadd.f32 %v331_v56, %v321_v50 }
 0x1d0   :  { %v311_v60 = vadd.f32 %v310_v49, %v281_v58 }
 0x1d2   :  { %v333_v61 = vadd.f32 %v332_v55, %v311_v60 }
 0x1d4   :  { %334 = vst [vmem:[%s493_s7] sm:$0x7] %v333_v61 }

</bundles_post_ra>
